<compile_context>
chip_gen: v7x
topology: tpu7x:2x2x1
jax: 0.10.0
libtpu: 0.0.40
codegen_flags: <defaults>
</compile_context>

<pallas_src>
import jax
import jax.numpy as jnp
from jax.experimental import pallas as pl
from jax.experimental.pallas import tpu as pltpu


def linear_kernel(xt_ref, w_ref, b_ref, o_ref):
    # xt_ref: (IN, TB)   -- batch on lanes (lane-dense)
    # w_ref : (OUT, IN)  -- resident across all grid steps
    # b_ref : (OUT, 1)   -- per-output-feature bias, broadcast across lanes
    # o_ref : (OUT, TB)
    acc = jnp.dot(w_ref[...], xt_ref[...], preferred_element_type=jnp.float32)
    o_ref[...] = (acc + b_ref[...]).astype(o_ref.dtype)


def softmax_classifier_forward(x, weight, bias, *, max_tb=2048):
    """Equivalent to nn.Linear(4, 3): y = x @ weight.T + bias.

    x:      (B, 4)  float32
    weight: (3, 4)  float32  (PyTorch layout: (out_features, in_features))
    bias:   (3,)    float32
    returns (B, 3)  float32 (logits; no softmax, matching the PyTorch module)
    """
    B, in_f = x.shape
    out_f = weight.shape[0]

    # Batch tile on the lane axis: multiple of 128, at least the whole (small)
    # batch, at most max_tb; pad the batch up to a multiple of the tile.
    tb = min(max_tb, pl.cdiv(B, 128) * 128)
    b_pad = pl.cdiv(B, tb) * tb

    xt = x.T                                    # (in_f, B): batch -> lanes
    if b_pad != B:
        xt = jnp.pad(xt, ((0, 0), (0, b_pad - B)))
    b2d = bias.reshape(out_f, 1)                # sublane-broadcast bias

    out_t = pl.pallas_call(
        linear_kernel,
        out_shape=jax.ShapeDtypeStruct((out_f, b_pad), x.dtype),
        grid=(b_pad // tb,),
        in_specs=[
            pl.BlockSpec((in_f, tb), lambda i: (0, i)),     # x^T batch tiles
            pl.BlockSpec((out_f, in_f), lambda i: (0, 0)),  # weight, resident
            pl.BlockSpec((out_f, 1), lambda i: (0, 0)),     # bias, resident
        ],
        out_specs=pl.BlockSpec((out_f, tb), lambda i: (0, i)),
        compiler_params=pltpu.CompilerParams(
            dimension_semantics=("parallel",)),
    )(xt, weight, b2d)

    # Back to the PyTorch (B, out_features) layout, dropping batch padding.
    return out_t[:, :B].T


if __name__ == "__main__":
    key = jax.random.PRNGKey(0)
    k_x, k_w, k_b = jax.random.split(key, 3)

    B, IN, OUT = 8, 4, 3

    # Deterministic parameter init mirroring PyTorch nn.Linear default
    # (uniform(-1/sqrt(in), 1/sqrt(in))).
    bound = 1.0 / jnp.sqrt(jnp.float32(IN))
    weight = jax.random.uniform(k_w, (OUT, IN), jnp.float32, -bound, bound)
    bias = jax.random.uniform(k_b, (OUT,), jnp.float32, -bound, bound)

    x = jax.random.normal(k_x, (B, IN), jnp.float32)

    out = softmax_classifier_forward(x, weight, bias)
    out = jax.block_until_ready(out)

    # Reference check against plain JAX (same semantics as PyTorch F.linear).
    ref = x @ weight.T + bias
    assert out.shape == (B, OUT)
    assert jnp.allclose(out, ref, atol=1e-5, rtol=1e-5)

    print("KERNEL_OK")
</pallas_src>

<mosaic_0001>
module attributes {stable_mosaic.version = 11 : i64} {
  func.func @linear_kernel(%arg0: i32, %arg1: memref<4x128xf32, #tpu.memory_space<vmem>>, %arg2: memref<3x4xf32, #tpu.memory_space<vmem>>, %arg3: memref<3x1xf32, #tpu.memory_space<vmem>>, %arg4: memref<3x128xf32, #tpu.memory_space<vmem>>) attributes {dimension_semantics = [#tpu.dimension_semantics<parallel>], iteration_bounds = array<i64: 1>, scalar_prefetch = 0 : i64, scratch_operands = 0 : i64, tpu.core_type = #tpu.core_type<tc>, window_params = [{transform_indices = @transform_0, window_bounds = array<i64: 4, 128>}, {pipeline_mode = #tpu.pipeline_mode<synchronous>, transform_indices = @transform_1, window_bounds = array<i64: 3, 4>}, {pipeline_mode = #tpu.pipeline_mode<synchronous>, transform_indices = @transform_2, window_bounds = array<i64: 3, 1>}, {transform_indices = @transform_3, window_bounds = array<i64: 3, 128>}]} {
    %c0 = arith.constant 0 : index
    %c0_0 = arith.constant 0 : index
    %0 = vector.load %arg2[%c0, %c0_0] : memref<3x4xf32, #tpu.memory_space<vmem>>, vector<3x4xf32>
    %c0_1 = arith.constant 0 : index
    %c0_2 = arith.constant 0 : index
    %1 = vector.load %arg1[%c0_1, %c0_2] : memref<4x128xf32, #tpu.memory_space<vmem>>, vector<4x128xf32>
    %cst = arith.constant dense<0.000000e+00> : vector<3x128xf32>
    %2 = tpu.matmul %0, %1, %cst {dimension_numbers = #tpu.dot_dimension_numbers<[1], [0], [0], [1], [0, 0, 1, 1], [], []>} : vector<3x4xf32>, vector<4x128xf32>, vector<3x128xf32> -> vector<3x128xf32>
    %c0_3 = arith.constant 0 : index
    %c0_4 = arith.constant 0 : index
    %3 = vector.load %arg3[%c0_3, %c0_4] : memref<3x1xf32, #tpu.memory_space<vmem>>, vector<3x1xf32>
    %4 = vector.broadcast %3 : vector<3x1xf32> to vector<3x128xf32>
    %5 = arith.addf %2, %4 : vector<3x128xf32>
    %c0_5 = arith.constant 0 : index
    %c0_6 = arith.constant 0 : index
    %6 = vector.load %arg4[%c0_5, %c0_6] : memref<3x128xf32, #tpu.memory_space<vmem>>, vector<3x128xf32>
    tpu.vector_store %arg4[%c0_5, %c0_6], %5 {strides = array<i32>} : memref<3x128xf32, #tpu.memory_space<vmem>>, vector<3x128xf32>,
    return
  }
  func.func @transform_0(%arg0: i32) -> (i32, i32) {
    %c0_i32 = arith.constant 0 : i32
    %c0_i32_0 = arith.constant 0 : i32
    return %c0_i32, %arg0 : i32, i32
  }
  func.func @transform_1(%arg0: i32) -> (i32, i32) {
    %c0_i32 = arith.constant 0 : i32
    %c0_i32_0 = arith.constant 0 : i32
    %c0_i32_1 = arith.constant 0 : i32
    return %c0_i32, %c0_i32_0 : i32, i32
  }
  func.func @transform_2(%arg0: i32) -> (i32, i32) {
    %c0_i32 = arith.constant 0 : i32
    %c0_i32_0 = arith.constant 0 : i32
    %c0_i32_1 = arith.constant 0 : i32
    return %c0_i32, %c0_i32_0 : i32, i32
  }
  func.func @transform_3(%arg0: i32) -> (i32, i32) {
    %c0_i32 = arith.constant 0 : i32
    %c0_i32_0 = arith.constant 0 : i32
    return %c0_i32, %arg0 : i32, i32
  }
}

</mosaic_0001>

<bundles_post_ra>
// kernel: tpu_custom_call.1
= control target key start
LH: loop header
LB: loop body
LE: loop exit
PB: predicated region body
PF: predicated region fallthrough
CT: control target
= control target key end

     0   :  { %vm27_vm0 = vcmask 1043456   ;;  %vm23_vm1 = vcmask 31744   ;;  %v154_v1 = vmov 0.0   ;;  %vm155_vm2 = vmmov 0   ;;  %s199_s0 = inlined_call_operand.vmem [shape: f32[4,128], index: 0, kind: input, shape index: {}]   ;;  %s200_s1 = inlined_call_operand.vmem [shape: f32[3,4], index: 1, kind: input, shape index: {}]   ;;  %s201_s2 = inlined_call_operand.vmem [shape: f32[3,1], index: 2, kind: input, shape index: {}]   ;;  %s202_s3 = inlined_call_operand.hbm [shape: f32[3,128], index: 3, kind: output, shape index: {}]  }
   0x1   :  { %v16_v0 = vld [vmem:[%s199_s0] sm:$0xf]  ;;  %120 = vmatprep.subr.mxu0 %v154_v1  ;;  %122 = vmatprep.mubr.msk.f32.mxu0 %vm155_vm2, %v154_v1  ;;  %v156_v4 = vmov 0  }
   0x2   :  { %v15_v2 = vld [vmem:[%s200_s1] sm:$0x7]  ;;  %121 = vmatpush3.msk.msra.mxu0 %vm27_vm0, %v16_v0  ;;  %129 = vset.pattern.permute.xlu0 %v156_v4 }
   0x3   :  { %v17_v3 = vld [vmem:[%s201_s2] sm:$0x7] }
   0x4   :  { %8 = vsyncpa [#allocation3], 0  ;;  %123 = vmatmul.mubr.msk.f32.vlgmr.msra.gmra.mrb[0].mxu0 %vm23_vm1, %v15_v2  ;;  %20 = vperm.xlu0 %129, %v17_v3   ;;  %s157_s0 = smov [#allocation2]  }
   0x5   :  { %s108_s18 = sshll.u32 %s157_s0, 4  ;;  %s109_s18 = int_to_ptr.vmem [resolvable:$true] %s108_s18 }
   0x6   :  { %s130_s19 = scalar_lea.vmem %s109_s18, 64  ;;  %p135_p1 = scmp.lt.s32.totalorder %s109_s18, %s109_s18 }
   0x7   :  { %p131_p0 = scmp.ne.s32.totalorder %s109_s18, %s130_s19  ;;  %p136_p2 = scmp.lt.s32.totalorder %s130_s19, %s130_s19 }
   0x9   :  { %p137_p3 = por %p136_p2, %p135_p1 }
   0xb   :  { %p138_p4 = pnand %p137_p3, %p131_p0 }
  0x83   :  { %v21_v5 = vpop.permute.xlu0 %20 }
  0xd7   :  { %v97_v6 = vpop.f32.mrb[0].mxu0 }
  0xd8   :  { %v98_v7 = vadd.f32 %v97_v6, %v21_v5  ;;  %v124_v8 = vpop.f32.mrb[1].mxu0 }
  0xda   :  { %101 = vst [vmem:[#allocation2] sm:$0x7] %v98_v7 }
  0xdb   :  { %141 = shalt.err (!%p138_p4)
}
  0xdc   :  { %s142_s20 = scalar_lea.hbm %s202_s3, 64 }
  0xdd   :  { %p143_p5 = scmp.ne.s32.totalorder %s202_s3, %s142_s20  ;;  %p146_p6 = scmp.lt.u32.totalorder %s142_s20, %s202_s3 }
  0xdf   :  { %p148_p7 = pnand %p146_p6, %p143_p5 }
  0xe1   :  { %151 = shalt.err (!%p148_p7)
}
  0xe2   :  { %111 = dma.vmem_to_hbm [thread:$0]  %s109_s18, 64, %s202_s3, [#allocation3]  }
  0xe3   :  { %152 = dma.done.wait [#allocation3], 64  }
  0xe4   :  { %153 = vsyncadd [#allocation3], 4294967232 }
  0xe5   :  { %115 = vsyncpa [#allocation3], 1 }

</bundles_post_ra>
